<compile_context>
chip_gen: v7x
topology: tpu7x:2x2x1
jax: 0.10.0
libtpu: 0.0.40
codegen_flags: <defaults>
</compile_context>

<pallas_src>
import functools

import jax
import jax.numpy as jnp
from jax.experimental import pallas as pl
from jax.experimental.pallas import tpu as pltpu

IN_F = 9       # fc1 input features
HID = 20       # hidden width (fc1..fc7 outputs)
OUT_F = 100    # fc8 output features
N_MID = 6      # fc2..fc7
MAX_TILE_B = 4096  # upper bound for the batch tile (multiple of 256)


# ---------------------------------------------------------------------------
# Kernel: whole 8-layer MLP on one batch tile.
#   x_ref    : [IN_F, TILE_B]      input tile (batch on lanes)
#   w1_ref   : [HID, IN_F]         fc1 weight  (PyTorch [out, in] layout)
#   wmid_ref : [N_MID, HID, HID]   fc2..fc7 weights stacked ([out, in])
#   w8t_ref  : [HID, OUT_F]        fc8 weight, pre-transposed ([in, out])
#   bhid_ref : [HID, 8]            column j = bias of layer j+1 (j=0..6)
#   b8_ref   : [1, OUT_F]          fc8 bias (row vector)
#   o_ref    : [TILE_B, OUT_F]     output tile, already batch-major
# ---------------------------------------------------------------------------
def collocation_mlp_kernel(x_ref, w1_ref, wmid_ref, w8t_ref, bhid_ref, b8_ref,
                           o_ref):
    x = x_ref[...]            # f32 already (mirrors pv.float())
    bh = bhid_ref[...]

    # fc1 + tanh  (batch on lanes: [HID, TILE_B])
    h = jnp.dot(w1_ref[...], x, preferred_element_type=jnp.float32)
    h = jnp.tanh(h + bh[:, 0:1])

    # fc2 .. fc7 + tanh (tiny fixed trip count -> static unroll)
    for j in range(N_MID):
        h = jnp.dot(wmid_ref[j], h, preferred_element_type=jnp.float32)
        h = jnp.tanh(h + bh[:, j + 1:j + 2])

    # fc8, no activation. Transpose only the small h ([HID, TILE_B]) on the
    # XLU so the output tile is stored batch-major and lane-dense-ish,
    # killing the external transpose pass.
    o_ref[...] = (
        jnp.dot(h.T, w8t_ref[...], preferred_element_type=jnp.float32)
        + b8_ref[...]
    )


# ---------------------------------------------------------------------------
# One-time parameter packing (hoisted out of the forward path).
# params: list of 8 (W[out, in], b[out]) in PyTorch Linear layout.
# ---------------------------------------------------------------------------
def prepare_params(params):
    (w1, b1), *mid, (w8, b8) = params
    w1 = jnp.asarray(w1, jnp.float32)                                # [20, 9]
    w_mid = jnp.stack([jnp.asarray(w, jnp.float32) for (w, _) in mid])  # [6,20,20]
    w8t = jnp.asarray(w8, jnp.float32).T                             # [20, 100]

    b_hid = jnp.zeros((HID, 8), jnp.float32)
    b_hid = b_hid.at[:, 0].set(jnp.asarray(b1, jnp.float32))
    for j, (_, bj) in enumerate(mid):
        b_hid = b_hid.at[:, j + 1].set(jnp.asarray(bj, jnp.float32))
    b8_row = jnp.asarray(b8, jnp.float32).reshape(1, OUT_F)

    return (w1, w_mid, w8t, b_hid, b8_row)


def _choose_tile_b(batch):
    """Batch tile: multiple of 256, <= MAX_TILE_B, >= 2 tiles when possible."""
    b256 = ((batch + 255) // 256) * 256
    tile = min(MAX_TILE_B, b256)
    # Prefer >= 2 grid tiles so "parallel" actually uses both v7x TensorCores.
    if b256 >= 512 and pl.cdiv(b256, tile) < 2:
        tile = max(256, ((b256 // 2) // 256) * 256)
    return tile


@functools.partial(jax.jit, static_argnums=(2,))
def _forward_packed(x, packed, tile_b):
    w1, w_mid, w8t, b_hid, b8_row = packed
    B = x.shape[0]
    num_tiles = pl.cdiv(B, tile_b)
    B_pad = num_tiles * tile_b

    # Feature-major feed [9, B_pad]; only the batch tail is padded (zeros are
    # sliced off at the end, tanh keeps them finite).
    x_t = x.astype(jnp.float32).T
    if B_pad != B:
        x_t = jnp.pad(x_t, ((0, 0), (0, B_pad - B)))

    out = pl.pallas_call(
        collocation_mlp_kernel,
        out_shape=jax.ShapeDtypeStruct((B_pad, OUT_F), jnp.float32),
        grid=(num_tiles,),
        in_specs=[
            pl.BlockSpec((IN_F, tile_b), lambda i: (0, i)),        # x stream
            pl.BlockSpec((HID, IN_F), lambda i: (0, 0)),           # W1 (resident)
            pl.BlockSpec((N_MID, HID, HID), lambda i: (0, 0, 0)),  # W2..W7
            pl.BlockSpec((HID, OUT_F), lambda i: (0, 0)),          # W8^T
            pl.BlockSpec((HID, 8), lambda i: (0, 0)),              # biases 1..7
            pl.BlockSpec((1, OUT_F), lambda i: (0, 0)),            # bias 8
        ],
        out_specs=pl.BlockSpec((tile_b, OUT_F), lambda i: (i, 0)),
        compiler_params=pltpu.CompilerParams(
            dimension_semantics=("parallel",)),
    )(x_t, w1, w_mid, w8t, b_hid, b8_row)

    return out[:B]  # already [B, 100], no transpose


def collocation_net_forward(x, params, *, tile_b=None):
    """x: [B, 9] (any float dtype); params: list of (W[out,in], b[out])."""
    packed = prepare_params(params)
    if tile_b is None:
        tile_b = _choose_tile_b(x.shape[0])
    return _forward_packed(x, packed, tile_b)


# ---------------------------------------------------------------------------
# Deterministic parameter init (PyTorch Linear-style uniform(+-1/sqrt(fan_in)))
# Weights in PyTorch layout: W[out, in], b[out].
# ---------------------------------------------------------------------------
def init_params(key):
    layer_dims = [(IN_F, HID)] + [(HID, HID)] * N_MID + [(HID, OUT_F)]
    params = []
    for fan_in, fan_out in layer_dims:
        key, kw, kb = jax.random.split(key, 3)
        bound = 1.0 / jnp.sqrt(jnp.float32(fan_in))
        w = jax.random.uniform(kw, (fan_out, fan_in), jnp.float32, -bound, bound)
        b = jax.random.uniform(kb, (fan_out,), jnp.float32, -bound, bound)
        params.append((w, b))
    return params


def reference_forward(x, params):
    h = x.astype(jnp.float32)
    for i, (w, b) in enumerate(params):
        h = h @ w.T + b
        if i < len(params) - 1:
            h = jnp.tanh(h)
    return h


if __name__ == "__main__":
    key = jax.random.PRNGKey(0)
    key, kx1, kx2 = jax.random.split(key, 3)
    params = init_params(key)
    packed = prepare_params(params)

    # Small batch (exercises single padded tile).
    B1 = 8
    x1 = jax.random.normal(kx1, (B1, IN_F), jnp.float32)
    out1 = jax.block_until_ready(_forward_packed(x1, packed, _choose_tile_b(B1)))
    ref1 = reference_forward(x1, params)
    assert out1.shape == (B1, OUT_F), out1.shape
    assert jnp.allclose(out1, ref1, atol=1e-5, rtol=1e-5), (
        float(jnp.max(jnp.abs(out1 - ref1))))

    # Ragged multi-tile batch (exercises pipelining + tail padding).
    B2 = 300
    x2 = jax.random.normal(kx2, (B2, IN_F), jnp.float32)
    out2 = jax.block_until_ready(collocation_net_forward(x2, params, tile_b=256))
    ref2 = reference_forward(x2, params)
    assert out2.shape == (B2, OUT_F), out2.shape
    assert jnp.allclose(out2, ref2, atol=1e-5, rtol=1e-5), (
        float(jnp.max(jnp.abs(out2 - ref2))))

    print("KERNEL_OK")
</pallas_src>

<mosaic_0001>
module attributes {stable_mosaic.version = 11 : i64} {
  func.func @collocation_mlp_kernel(%arg0: i32, %arg1: memref<9x256xf32, #tpu.memory_space<vmem>>, %arg2: memref<20x9xf32, #tpu.memory_space<vmem>>, %arg3: memref<6x20x20xf32, #tpu.memory_space<vmem>>, %arg4: memref<20x100xf32, #tpu.memory_space<vmem>>, %arg5: memref<20x8xf32, #tpu.memory_space<vmem>>, %arg6: memref<1x100xf32, #tpu.memory_space<vmem>>, %arg7: memref<256x100xf32, #tpu.memory_space<vmem>>) attributes {dimension_semantics = [#tpu.dimension_semantics<parallel>], iteration_bounds = array<i64: 1>, scalar_prefetch = 0 : i64, scratch_operands = 0 : i64, tpu.core_type = #tpu.core_type<tc>, window_params = [{transform_indices = @transform_0, window_bounds = array<i64: 9, 256>}, {pipeline_mode = #tpu.pipeline_mode<synchronous>, transform_indices = @transform_1, window_bounds = array<i64: 20, 9>}, {pipeline_mode = #tpu.pipeline_mode<synchronous>, transform_indices = @transform_2, window_bounds = array<i64: 6, 20, 20>}, {pipeline_mode = #tpu.pipeline_mode<synchronous>, transform_indices = @transform_3, window_bounds = array<i64: 20, 100>}, {pipeline_mode = #tpu.pipeline_mode<synchronous>, transform_indices = @transform_4, window_bounds = array<i64: 20, 8>}, {pipeline_mode = #tpu.pipeline_mode<synchronous>, transform_indices = @transform_5, window_bounds = array<i64: 1, 100>}, {transform_indices = @transform_6, window_bounds = array<i64: 256, 100>}]} {
    %c0 = arith.constant 0 : index
    %c0_0 = arith.constant 0 : index
    %0 = vector.load %arg1[%c0, %c0_0] : memref<9x256xf32, #tpu.memory_space<vmem>>, vector<9x256xf32>
    %c0_1 = arith.constant 0 : index
    %c0_2 = arith.constant 0 : index
    %1 = vector.load %arg5[%c0_1, %c0_2] : memref<20x8xf32, #tpu.memory_space<vmem>>, vector<20x8xf32>
    %c0_3 = arith.constant 0 : index
    %c0_4 = arith.constant 0 : index
    %2 = vector.load %arg2[%c0_3, %c0_4] : memref<20x9xf32, #tpu.memory_space<vmem>>, vector<20x9xf32>
    %cst = arith.constant dense<0.000000e+00> : vector<20x256xf32>
    %3 = tpu.matmul %2, %0, %cst {dimension_numbers = #tpu.dot_dimension_numbers<[1], [0], [0], [1], [0, 0, 1, 1], [], []>} : vector<20x9xf32>, vector<9x256xf32>, vector<20x256xf32> -> vector<20x256xf32>
    %4 = vector.extract_strided_slice %1 {offsets = [0, 0], sizes = [20, 1], strides = [1, 1]} : vector<20x8xf32> to vector<20x1xf32>
    %5 = vector.broadcast %4 : vector<20x1xf32> to vector<20x256xf32>
    %6 = arith.addf %3, %5 : vector<20x256xf32>
    %7 = math.tanh %6 : vector<20x256xf32>
    %c0_5 = arith.constant 0 : index
    %c0_6 = arith.constant 0 : index
    %c0_7 = arith.constant 0 : index
    %8 = vector.load %arg3[%c0_5, %c0_6, %c0_7] : memref<6x20x20xf32, #tpu.memory_space<vmem>>, vector<1x20x20xf32>
    %9 = vector.shape_cast %8 : vector<1x20x20xf32> to vector<20x20xf32>
    %cst_8 = arith.constant dense<0.000000e+00> : vector<20x256xf32>
    %10 = tpu.matmul %9, %7, %cst_8 {dimension_numbers = #tpu.dot_dimension_numbers<[1], [0], [0], [1], [0, 0, 1, 1], [], []>} : vector<20x20xf32>, vector<20x256xf32>, vector<20x256xf32> -> vector<20x256xf32>
    %11 = vector.extract_strided_slice %1 {offsets = [0, 1], sizes = [20, 1], strides = [1, 1]} : vector<20x8xf32> to vector<20x1xf32>
    %12 = vector.broadcast %11 : vector<20x1xf32> to vector<20x256xf32>
    %13 = arith.addf %10, %12 : vector<20x256xf32>
    %14 = math.tanh %13 : vector<20x256xf32>
    %c1 = arith.constant 1 : index
    %c0_9 = arith.constant 0 : index
    %c0_10 = arith.constant 0 : index
    %15 = vector.load %arg3[%c1, %c0_9, %c0_10] : memref<6x20x20xf32, #tpu.memory_space<vmem>>, vector<1x20x20xf32>
    %16 = vector.shape_cast %15 : vector<1x20x20xf32> to vector<20x20xf32>
    %cst_11 = arith.constant dense<0.000000e+00> : vector<20x256xf32>
    %17 = tpu.matmul %16, %14, %cst_11 {dimension_numbers = #tpu.dot_dimension_numbers<[1], [0], [0], [1], [0, 0, 1, 1], [], []>} : vector<20x20xf32>, vector<20x256xf32>, vector<20x256xf32> -> vector<20x256xf32>
    %18 = vector.extract_strided_slice %1 {offsets = [0, 2], sizes = [20, 1], strides = [1, 1]} : vector<20x8xf32> to vector<20x1xf32>
    %19 = vector.broadcast %18 : vector<20x1xf32> to vector<20x256xf32>
    %20 = arith.addf %17, %19 : vector<20x256xf32>
    %21 = math.tanh %20 : vector<20x256xf32>
    %c2 = arith.constant 2 : index
    %c0_12 = arith.constant 0 : index
    %c0_13 = arith.constant 0 : index
    %22 = vector.load %arg3[%c2, %c0_12, %c0_13] : memref<6x20x20xf32, #tpu.memory_space<vmem>>, vector<1x20x20xf32>
    %23 = vector.shape_cast %22 : vector<1x20x20xf32> to vector<20x20xf32>
    %cst_14 = arith.constant dense<0.000000e+00> : vector<20x256xf32>
    %24 = tpu.matmul %23, %21, %cst_14 {dimension_numbers = #tpu.dot_dimension_numbers<[1], [0], [0], [1], [0, 0, 1, 1], [], []>} : vector<20x20xf32>, vector<20x256xf32>, vector<20x256xf32> -> vector<20x256xf32>
    %25 = vector.extract_strided_slice %1 {offsets = [0, 3], sizes = [20, 1], strides = [1, 1]} : vector<20x8xf32> to vector<20x1xf32>
    %26 = vector.broadcast %25 : vector<20x1xf32> to vector<20x256xf32>
    %27 = arith.addf %24, %26 : vector<20x256xf32>
    %28 = math.tanh %27 : vector<20x256xf32>
    %c3 = arith.constant 3 : index
    %c0_15 = arith.constant 0 : index
    %c0_16 = arith.constant 0 : index
    %29 = vector.load %arg3[%c3, %c0_15, %c0_16] : memref<6x20x20xf32, #tpu.memory_space<vmem>>, vector<1x20x20xf32>
    %30 = vector.shape_cast %29 : vector<1x20x20xf32> to vector<20x20xf32>
    %cst_17 = arith.constant dense<0.000000e+00> : vector<20x256xf32>
    %31 = tpu.matmul %30, %28, %cst_17 {dimension_numbers = #tpu.dot_dimension_numbers<[1], [0], [0], [1], [0, 0, 1, 1], [], []>} : vector<20x20xf32>, vector<20x256xf32>, vector<20x256xf32> -> vector<20x256xf32>
    %32 = vector.extract_strided_slice %1 {offsets = [0, 4], sizes = [20, 1], strides = [1, 1]} : vector<20x8xf32> to vector<20x1xf32>
    %33 = vector.broadcast %32 : vector<20x1xf32> to vector<20x256xf32>
    %34 = arith.addf %31, %33 : vector<20x256xf32>
    %35 = math.tanh %34 : vector<20x256xf32>
    %c4 = arith.constant 4 : index
    %c0_18 = arith.constant 0 : index
    %c0_19 = arith.constant 0 : index
    %36 = vector.load %arg3[%c4, %c0_18, %c0_19] : memref<6x20x20xf32, #tpu.memory_space<vmem>>, vector<1x20x20xf32>
    %37 = vector.shape_cast %36 : vector<1x20x20xf32> to vector<20x20xf32>
    %cst_20 = arith.constant dense<0.000000e+00> : vector<20x256xf32>
    %38 = tpu.matmul %37, %35, %cst_20 {dimension_numbers = #tpu.dot_dimension_numbers<[1], [0], [0], [1], [0, 0, 1, 1], [], []>} : vector<20x20xf32>, vector<20x256xf32>, vector<20x256xf32> -> vector<20x256xf32>
    %39 = vector.extract_strided_slice %1 {offsets = [0, 5], sizes = [20, 1], strides = [1, 1]} : vector<20x8xf32> to vector<20x1xf32>
    %40 = vector.broadcast %39 : vector<20x1xf32> to vector<20x256xf32>
    %41 = arith.addf %38, %40 : vector<20x256xf32>
    %42 = math.tanh %41 : vector<20x256xf32>
    %c5 = arith.constant 5 : index
    %c0_21 = arith.constant 0 : index
    %c0_22 = arith.constant 0 : index
    %43 = vector.load %arg3[%c5, %c0_21, %c0_22] : memref<6x20x20xf32, #tpu.memory_space<vmem>>, vector<1x20x20xf32>
    %44 = vector.shape_cast %43 : vector<1x20x20xf32> to vector<20x20xf32>
    %cst_23 = arith.constant dense<0.000000e+00> : vector<20x256xf32>
    %45 = tpu.matmul %44, %42, %cst_23 {dimension_numbers = #tpu.dot_dimension_numbers<[1], [0], [0], [1], [0, 0, 1, 1], [], []>} : vector<20x20xf32>, vector<20x256xf32>, vector<20x256xf32> -> vector<20x256xf32>
    %46 = vector.extract_strided_slice %1 {offsets = [0, 6], sizes = [20, 1], strides = [1, 1]} : vector<20x8xf32> to vector<20x1xf32>
    %47 = vector.broadcast %46 : vector<20x1xf32> to vector<20x256xf32>
    %48 = arith.addf %45, %47 : vector<20x256xf32>
    %49 = math.tanh %48 : vector<20x256xf32>
    %50 = tpu.transpose %49, [1, 0] : vector<20x256xf32> -> vector<256x20xf32>
    %c0_24 = arith.constant 0 : index
    %c0_25 = arith.constant 0 : index
    %51 = vector.load %arg4[%c0_24, %c0_25] : memref<20x100xf32, #tpu.memory_space<vmem>>, vector<20x100xf32>
    %cst_26 = arith.constant dense<0.000000e+00> : vector<256x100xf32>
    %52 = tpu.matmul %50, %51, %cst_26 {dimension_numbers = #tpu.dot_dimension_numbers<[1], [0], [0], [1], [0, 0, 1, 1], [], []>} : vector<256x20xf32>, vector<20x100xf32>, vector<256x100xf32> -> vector<256x100xf32>
    %c0_27 = arith.constant 0 : index
    %c0_28 = arith.constant 0 : index
    %53 = vector.load %arg6[%c0_27, %c0_28] : memref<1x100xf32, #tpu.memory_space<vmem>>, vector<1x100xf32>
    %54 = vector.broadcast %53 : vector<1x100xf32> to vector<256x100xf32>
    %55 = arith.addf %52, %54 : vector<256x100xf32>
    %c0_29 = arith.constant 0 : index
    %c0_30 = arith.constant 0 : index
    %56 = vector.load %arg7[%c0_29, %c0_30] : memref<256x100xf32, #tpu.memory_space<vmem>>, vector<256x100xf32>
    tpu.vector_store %arg7[%c0_29, %c0_30], %55 {strides = array<i32>} : memref<256x100xf32, #tpu.memory_space<vmem>>, vector<256x100xf32>,
    return
  }
  func.func @transform_0(%arg0: i32) -> (i32, i32) {
    %c0_i32 = arith.constant 0 : i32
    %c0_i32_0 = arith.constant 0 : i32
    return %c0_i32, %arg0 : i32, i32
  }
  func.func @transform_1(%arg0: i32) -> (i32, i32) {
    %c0_i32 = arith.constant 0 : i32
    %c0_i32_0 = arith.constant 0 : i32
    %c0_i32_1 = arith.constant 0 : i32
    return %c0_i32, %c0_i32_0 : i32, i32
  }
  func.func @transform_2(%arg0: i32) -> (i32, i32, i32) {
    %c0_i32 = arith.constant 0 : i32
    %c0_i32_0 = arith.constant 0 : i32
    %c0_i32_1 = arith.constant 0 : i32
    %c0_i32_2 = arith.constant 0 : i32
    return %c0_i32, %c0_i32_0, %c0_i32_1 : i32, i32, i32
  }
  func.func @transform_3(%arg0: i32) -> (i32, i32) {
    %c0_i32 = arith.constant 0 : i32
    %c0_i32_0 = arith.constant 0 : i32
    %c0_i32_1 = arith.constant 0 : i32
    return %c0_i32, %c0_i32_0 : i32, i32
  }
  func.func @transform_4(%arg0: i32) -> (i32, i32) {
    %c0_i32 = arith.constant 0 : i32
    %c0_i32_0 = arith.constant 0 : i32
    %c0_i32_1 = arith.constant 0 : i32
    return %c0_i32, %c0_i32_0 : i32, i32
  }
  func.func @transform_5(%arg0: i32) -> (i32, i32) {
    %c0_i32 = arith.constant 0 : i32
    %c0_i32_0 = arith.constant 0 : i32
    %c0_i32_1 = arith.constant 0 : i32
    return %c0_i32, %c0_i32_0 : i32, i32
  }
  func.func @transform_6(%arg0: i32) -> (i32, i32) {
    %c0_i32 = arith.constant 0 : i32
    %c0_i32_0 = arith.constant 0 : i32
    return %arg0, %c0_i32 : i32, i32
  }
}

</mosaic_0001>

<bundles_post_ra>
// kernel: _forward_packed.1
= control target key start
LH: loop header
LB: loop body
LE: loop exit
PB: predicated region body
PF: predicated region fallthrough
CT: control target
= control target key end

     0   :  { %11 = vsyncpa [#allocation3], 0  ;;  %s1670_s21 = smov [#allocation2]   ;;  %s2092_s0 = inlined_call_operand.vmem [shape: f32[9,256], index: 0, kind: input, shape index: {}]   ;;  %s2093_s1 = inlined_call_operand.vmem [shape: f32[20,9], index: 1, kind: input, shape index: {}]   ;;  %s2094_s2 = inlined_call_operand.vmem [shape: f32[6,20,20], index: 2, kind: input, shape index: {}]   ;;  %s2095_s3 = inlined_call_operand.hbm [shape: f32[20,100], index: 3, kind: input, shape index: {}]   ;;  %s2096_s4 = inlined_call_operand.vmem [shape: f32[20,8], index: 4, kind: input, shape index: {}]   ;;  %s2097_s5 = inlined_call_operand.vmem [shape: f32[1,100], index: 5, kind: input, shape index: {}]   ;;  %s2098_s6 = inlined_call_operand.vmem [shape: f32[256,100], index: 6, kind: output, shape index: {}]  }
   0x1   :  { %s23_s22 = sshll.u32 %s1670_s21, 4  ;;  %s1646_s25 = scalar_lea.hbm %s2095_s3, 384  ;;  %s24_s22 = int_to_ptr.vmem [resolvable:$true] %s23_s22 }
   0x2   :  { %p1647_p0 = scmp.ne.s32.totalorder %s2095_s3, %s1646_s25  ;;  %p1650_p1 = scmp.lt.u32.totalorder %s1646_s25, %s2095_s3 }
   0x4   :  { %p1652_p2 = pnand %p1650_p1, %p1647_p0 }
   0x6   :  { %1655 = shalt.err (!%p1652_p2)
}
   0x7   :  { %s1656_s30 = scalar_lea.vmem %s24_s22, 384  ;;  %p1661_p4 = scmp.lt.s32.totalorder %s24_s22, %s24_s22 }
   0x8   :  { %p1657_p3 = scmp.ne.s32.totalorder %s24_s22, %s1656_s30  ;;  %p1662_p5 = scmp.lt.s32.totalorder %s1656_s30, %s1656_s30 }
   0xa   :  { %p1663_p6 = por %p1662_p5, %p1661_p4 }
   0xc   :  { %p1664_p7 = pnand %p1663_p6, %p1657_p3 }
   0xe   :  { %1667 = shalt.err (!%p1664_p7)
}
   0xf   :  { %s1671_s7 = smov 128   ;;  %s1672_s8 = smov 8  }
  0x10   :  { %29 = dma.hbm_to_vmem [thread:$0]  %s2095_s3, 384, %s24_s22, [#allocation3], %s1671_s7, %s1671_s7, %s1672_s8  }
  0x11   :  { %1668 = dma.done.wait [#allocation3], 384  }
  0x12   :  { %1669 = vsyncadd [#allocation3], 4294966912  ;;  %v1673_v0 = vmov 0.0   ;;  %v1674_v1 = vmov 0   ;;  %vm72_vm0 = vcmask 1040384   ;;  %vm1675_vm1 = vmmov 1  }
  0x13   :  { %143 = vmatprep.mubr.f32.mxu0 %v1673_v0  ;;  %264 = vmatprep.mubr.f32.mxu1 %v1673_v0  ;;  %vm1499_vm2 = vmpackc.low %vm72_vm0, %vm1675_vm1  ;;  %v38_v2 = vld [vmem:[%s2092_s0 + $0x8] sm:$0xff]  ;;  %v40_v3 = vld [vmem:[%s2092_s0 + $0x18] sm:$0x1]  ;;  %vm62_vm3 = vcmask 72704   ;;  %v1676_v14 = vmov 1   ;;  %vm193_vm4 = vcmask 1043456  }
  0x14   :  { %1548 = vset.pattern.permute.xlu0 %v1674_v1  ;;  %1549 = vset.pattern.permute.xlu1 %v1674_v1  ;;  %v37_v4 = vld [vmem:[%s2092_s0] sm:$0xff]  ;;  %v1498_v5 = vpack.c.bf16 %v40_v3, %v38_v2  ;;  %v39_v6 = vld [vmem:[%s2092_s0 + $0x10] sm:$0x1]  ;;  %v1760_v11 = vld [vmem:[%s2096_s4 + $0x8] sm:$0xff]  ;;  %vm183_vm5 = vcmask 162816   ;;  %v1677_v41 = vmov 2  }
  0x15   :  { %v1501_v7 = vpack.c.bf16 %v39_v6, %v37_v4  ;;  %v1746_v8 = vld [vmem:[%s2096_s4] sm:$0xff]  ;;  %v1752_v9 = vld [vmem:[%s2096_s4 + $0x10] sm:$0xf]  ;;  %v45_v12 = vld [vmem:[%s2093_s1 + $0x8] sm:$0xff]  ;;  %vm1287_vm6 = vcmask 818176  }
  0x16   :  { %1500 = vmatprep.subr.msk.bf16.mxu0 %vm1499_vm2, %v1498_v5  ;;  %49 = vperm.xlu0 %1548, %v1746_v8   ;;  %v44_v10 = vld [vmem:[%s2093_s1] sm:$0xff]  ;;  %v46_v13 = vld [vmem:[%s2093_s1 + $0x10] sm:$0xf]  ;;  %v169_v39 = vld [vmem:[%s2094_s2 + $0x8] sm:$0xff]  ;;  %v1678_v5 = vmov 3  }
  0x17   :  { %1503 = vmatpush1.bf16.msk.msra.mxu0 %vm1499_vm2, %v1501_v7  ;;  %59 = vperm.xlu1 %1549, %v1752_v9   ;;  %v168_v37 = vld [vmem:[%s2094_s2] sm:$0xff]  ;;  %v170_v40 = vld [vmem:[%s2094_s2 + $0x10] sm:$0xf]  ;;  %v1335_v1 = vld [vmem:[%s2094_s2 + $0x18] sm:$0xff] }
  0x18   :  { %v1336_v3 = vld [vmem:[%s2094_s2 + $0x20] sm:$0xff]  ;;  %v1337_v4 = vld [vmem:[%s2094_s2 + $0x28] sm:$0xf] }
  0x1a   :  { %1327 = vmatmul.mubr.msk.f32.vlgmr.msra.gmra.mrb[0].mxu0 %vm62_vm3, %v44_v10  ;;  %54 = vperm.xlu0 %1548, %v1760_v11  }
  0x1b   :  { %149 = vmatprep.mubr.f32.mxu0 %v1673_v0  ;;  %1550 = vset.pattern.permute.xlu1 %v1676_v14 }
  0x1c   :  { %172 = vperm.xlu1 %1550, %v1746_v8  }
  0x1e   :  { %1328 = vmatmul.mubr.msk.f32.gmra.mrb[2].mxu0 %vm62_vm3, %v45_v12  ;;  %1551 = vset.pattern.permute.xlu0 %v1676_v14 }
  0x1f   :  { %155 = vmatprep.mubr.f32.mxu0 %v1673_v0  ;;  %176 = vperm.xlu0 %1551, %v1760_v11  }
  0x20   :  { %180 = vperm.xlu1 %1550, %v1752_v9  }
  0x22   :  { %1329 = vmatmul.mubr.msk.f32.gmra.mrb[4].mxu0 %vm62_vm3, %v46_v13 }
  0x23   :  { %384 = vmatprep.mubr.f32.mxu0 %v1673_v0  ;;  %1553 = vset.pattern.permute.xlu0 %v1677_v41 }
  0x24   :  { %1552 = vset.pattern.permute.xlu1 %v1677_v41  ;;  %298 = vperm.xlu0 %1553, %v1760_v11  }
  0x25   :  { %294 = vperm.xlu1 %1552, %v1746_v8  }
  0x28   :  { %1555 = vset.pattern.permute.xlu0 %v1678_v5 }
  0x29   :  { %302 = vperm.xlu1 %1552, %v1752_v9   ;;  %418 = vperm.xlu0 %1555, %v1760_v11  }
  0x2d   :  { %1554 = vset.pattern.permute.xlu1 %v1678_v5 }
  0x2e   :  { %414 = vperm.xlu1 %1554, %v1746_v8  }
  0x32   :  { %422 = vperm.xlu1 %1554, %v1752_v9  }
  0x95   :  { %v50_v15 = vpop.permute.xlu0 %49 }
  0x96   :  { %v60_v25 = vpop.permute.xlu1 %59 }
  0x99   :  { %v55_v20 = vpop.permute.xlu0 %54 }
  0x9b   :  { %v173_v42 = vpop.permute.xlu1 %172 }
  0x9e   :  { %v177_v47 = vpop.permute.xlu0 %176 }
  0x9f   :  { %v181_v53 = vpop.permute.xlu1 %180 }
  0xa3   :  { %v299_v14 = vpop.permute.xlu0 %298 }
  0xa4   :  { %v295_v6 = vpop.permute.xlu1 %294 }
  0xa8   :  { %v419_v41 = vpop.permute.xlu0 %418 }
  0xed   :  { %v145_v16 = vpop.f32.mrb[0].mxu0 }
  0xee   :  { %v146_v17 = vadd.f32 %v145_v16, %v50_v15  ;;  %v147_v18 = vpop.f32.mrb[1].mxu0 }
  0xef   :  { %v148_v19 = vadd.f32 %v147_v18, %v50_v15 }
  0xf0   :  { %1562 = vtanh.f32 %v146_v17 }
  0xf1   :  { %v151_v21 = vpop.f32.mrb[2].mxu0  ;;  %1564 = vtanh.f32 %v148_v19 }
  0xf2   :  { %v152_v22 = vadd.f32 %v151_v21, %v55_v20  ;;  %v153_v23 = vpop.f32.mrb[3].mxu0 }
  0xf3   :  { %v154_v24 = vadd.f32 %v153_v23, %v55_v20  ;;  %v303_v20 = vpop.permute.xlu1 %302 }
  0xf4   :  { %1566 = vtanh.f32 %v152_v22 }
  0xf5   :  { %1568 = vtanh.f32 %v154_v24  ;;  %v157_v26 = vpop.f32.mrb[4].mxu0 }
  0xf6   :  { %v159_v27 = vpop.f32.mrb[5].mxu0  ;;  %v158_v29 = vadd.f32 %v157_v26, %v60_v25 }
  0xf7   :  { %v160_v28 = vadd.f32 %v159_v27, %v60_v25 }
  0xf9   :  { %1570 = vtanh.f32 %v160_v28 }
  0xfa   :  { %v1563_v30 = vpop.eup %1562  ;;  %1572 = vtanh.f32 %v158_v29 }
  0xfb   :  { %v1565_v31 = vpop.eup %1564 }
  0xfe   :  { %v1567_v32 = vpop.eup %1566 }
  0xff   :  { %v1569_v33 = vpop.eup %1568  ;;  %v1506_v34 = vpack.c.bf16 %v1567_v32, %v1563_v30 }
 0x100   :  { %v1504_v35 = vpack.c.bf16 %v1569_v33, %v1565_v31  ;;  %v1343_v31 = vld [vmem:[%s2094_s2 + $0x30] sm:$0xff]  ;;  %v1344_v33 = vld [vmem:[%s2094_s2 + $0x38] sm:$0xff] }
 0x102   :  { %1505 = vmatprep.subr.bf16.mxu1 %v1504_v35  ;;  %v1679_v35 = vmov 4  }
 0x103   :  { %v1571_v36 = vpop.eup %1570  ;;  %1507 = vmatpush1.bf16.msra.mxu1 %v1506_v34  ;;  %v1345_v34 = vld [vmem:[%s2094_s2 + $0x40] sm:$0xf]  ;;  %1556 = vset.pattern.permute.xlu1 %v1679_v35 }
 0x104   :  { %1330 = vmatprep.subr.msk.mxu1 %vm193_vm4, %v1571_v36  ;;  %v1573_v38 = vpop.eup %1572  ;;  %1557 = vset.pattern.permute.xlu0 %v1679_v35  ;;  %v415_v36 = vpop.permute.xlu1 %414 }
 0x105   :  { %534 = vperm.xlu1 %1556, %v1746_v8   ;;  %538 = vperm.xlu0 %1557, %v1760_v11  }
 0x107   :  { %1331 = vmatpush1.msk.msra.mxu1 %vm193_vm4, %v1573_v38 }
 0x108   :  { %1332 = vmatmul.mubr.msk.f32.vlgmr.msra.gmra.mrb[0].mxu1 %vm183_vm5, %v168_v37 }
 0x109   :  { %270 = vmatprep.mubr.f32.mxu1 %v1673_v0  ;;  %542 = vperm.xlu1 %1556, %v1752_v9  }
 0x10c   :  { %1333 = vmatmul.mubr.msk.f32.gmra.mrb[2].mxu1 %vm183_vm5, %v169_v39 }
 0x10d   :  { %276 = vmatprep.mubr.f32.mxu1 %v1673_v0 }
 0x110   :  { %1334 = vmatmul.mubr.msk.f32.gmra.mrb[4].mxu1 %vm183_vm5, %v170_v40 }
 0x111   :  { %504 = vmatprep.mubr.f32.mxu1 %v1673_v0 }
 0x184   :  { %v539_v5 = vpop.permute.xlu0 %538 }
 0x1db   :  { %v266_v43 = vpop.f32.mrb[0].mxu1 }
 0x1dc   :  { %v267_v44 = vadd.f32 %v266_v43, %v173_v42  ;;  %v268_v45 = vpop.f32.mrb[1].mxu1 }
 0x1dd   :  { %v269_v46 = vadd.f32 %v268_v45, %v173_v42 }
 0x1de   :  { %1574 = vtanh.f32 %v267_v44 }
 0x1df   :  { %v272_v48 = vpop.f32.mrb[2].mxu1  ;;  %1576 = vtanh.f32 %v269_v46 }
 0x1e0   :  { %v273_v49 = vadd.f32 %v272_v48, %v177_v47  ;;  %v274_v50 = vpop.f32.mrb[3].mxu1 }
 0x1e1   :  { %v275_v51 = vadd.f32 %v274_v50, %v177_v47  ;;  %v423_v47 = vpop.permute.xlu1 %422 }
 0x1e2   :  { %1578 = vtanh.f32 %v273_v49 }
 0x1e3   :  { %1580 = vtanh.f32 %v275_v51  ;;  %v278_v52 = vpop.f32.mrb[4].mxu1 }
 0x1e4   :  { %v280_v54 = vpop.f32.mrb[5].mxu1  ;;  %v279_v56 = vadd.f32 %v278_v52, %v181_v53 }
 0x1e5   :  { %v281_v55 = vadd.f32 %v280_v54, %v181_v53 }
 0x1e7   :  { %1582 = vtanh.f32 %v281_v55 }
 0x1e8   :  { %v1575_v57 = vpop.eup %1574  ;;  %1584 = vtanh.f32 %v279_v56 }
 0x1e9   :  { %v1577_v58 = vpop.eup %1576 }
 0x1ec   :  { %v1579_v59 = vpop.eup %1578 }
 0x1ed   :  { %v1581_v60 = vpop.eup %1580  ;;  %v1510_v61 = vpack.c.bf16 %v1579_v59, %v1575_v57 }
 0x1ee   :  { %v1508_v62 = vpack.c.bf16 %v1581_v60, %v1577_v58  ;;  %v1351_v58 = vld [vmem:[%s2094_s2 + $0x48] sm:$0xff]  ;;  %v1352_v60 = vld [vmem:[%s2094_s2 + $0x50] sm:$0xff] }
 0x1f0   :  { %1509 = vmatprep.subr.bf16.mxu0 %v1508_v62  ;;  %v1680_v62 = vmov 5  }
 0x1f1   :  { %v1583_v63 = vpop.eup %1582  ;;  %1511 = vmatpush1.bf16.msra.mxu0 %v1510_v61  ;;  %v1353_v61 = vld [vmem:[%s2094_s2 + $0x58] sm:$0xf]  ;;  %1558 = vset.pattern.permute.xlu1 %v1680_v62 }
 0x1f2   :  { %1338 = vmatprep.subr.msk.mxu0 %vm193_vm4, %v1583_v63  ;;  %v1585_v2 = vpop.eup %1584  ;;  %1559 = vset.pattern.permute.xlu0 %v1680_v62  ;;  %v535_v63 = vpop.permute.xlu1 %534 }
 0x1f3   :  { %654 = vperm.xlu1 %1558, %v1746_v8   ;;  %658 = vperm.xlu0 %1559, %v1760_v11  }
 0x1f5   :  { %1339 = vmatpush1.msk.msra.mxu0 %vm193_vm4, %v1585_v2 }
 0x1f6   :  { %1340 = vmatmul.mubr.msk.f32.vlgmr.msra.gmra.mrb[6].mxu0 %vm183_vm5, %v1335_v1 }
 0x1f7   :  { %390 = vmatprep.mubr.f32.mxu0 %v1673_v0  ;;  %662 = vperm.xlu1 %1558, %v1752_v9  }
 0x1fa   :  { %1341 = vmatmul.mubr.msk.f32.gmra.mrb[8].mxu0 %vm183_vm5, %v1336_v3 }
 0x1fb   :  { %396 = vmatprep.mubr.f32.mxu0 %v1673_v0 }
 0x1fe   :  { %1342 = vmatmul.mubr.msk.f32.gmra.mrb[10].mxu0 %vm183_vm5, %v1337_v4 }
 0x1ff   :  { %624 = vmatprep.mubr.f32.mxu0 %v1673_v0 }
 0x272   :  { %v659_v35 = vpop.permute.xlu0 %658 }
 0x2c9   :  { %v386_v7 = vpop.f32.mrb[6].mxu0 }
 0x2ca   :  { %v387_v10 = vadd.f32 %v386_v7, %v295_v6  ;;  %v388_v12 = vpop.f32.mrb[7].mxu0 }
 0x2cb   :  { %v389_v13 = vadd.f32 %v388_v12, %v295_v6 }
 0x2cc   :  { %1586 = vtanh.f32 %v387_v10 }
 0x2cd   :  { %v392_v15 = vpop.f32.mrb[8].mxu0  ;;  %1588 = vtanh.f32 %v389_v13 }
 0x2ce   :  { %v393_v16 = vadd.f32 %v392_v15, %v299_v14  ;;  %v394_v17 = vpop.f32.mrb[9].mxu0 }
 0x2cf   :  { %v395_v18 = vadd.f32 %v394_v17, %v299_v14  ;;  %v543_v14 = vpop.permute.xlu1 %542 }
 0x2d0   :  { %1590 = vtanh.f32 %v393_v16 }
 0x2d1   :  { %1592 = vtanh.f32 %v395_v18  ;;  %v398_v19 = vpop.f32.mrb[10].mxu0 }
 0x2d2   :  { %v400_v21 = vpop.f32.mrb[11].mxu0  ;;  %v399_v23 = vadd.f32 %v398_v19, %v303_v20 }
 0x2d3   :  { %v401_v22 = vadd.f32 %v400_v21, %v303_v20 }
 0x2d5   :  { %1594 = vtanh.f32 %v401_v22 }
 0x2d6   :  { %v1587_v24 = vpop.eup %1586  ;;  %1596 = vtanh.f32 %v399_v23 }
 0x2d7   :  { %v1589_v25 = vpop.eup %1588 }
 0x2da   :  { %v1591_v26 = vpop.eup %1590 }
 0x2db   :  { %v1593_v27 = vpop.eup %1592  ;;  %v1514_v28 = vpack.c.bf16 %v1591_v26, %v1587_v24 }
 0x2dc   :  { %v1512_v29 = vpack.c.bf16 %v1593_v27, %v1589_v25  ;;  %v1359_v25 = vld [vmem:[%s2094_s2 + $0x60] sm:$0xff]  ;;  %v1360_v27 = vld [vmem:[%s2094_s2 + $0x68] sm:$0xff] }
 0x2de   :  { %1513 = vmatprep.subr.bf16.mxu1 %v1512_v29  ;;  %v1681_v29 = vmov 6  }
 0x2df   :  { %v1595_v30 = vpop.eup %1594  ;;  %1515 = vmatpush1.bf16.msra.mxu1 %v1514_v28  ;;  %v1361_v28 = vld [vmem:[%s2094_s2 + $0x70] sm:$0xf]  ;;  %1560 = vset.pattern.permute.xlu1 %v1681_v29 }
 0x2e0   :  { %1346 = vmatprep.subr.msk.mxu1 %vm193_vm4, %v1595_v30  ;;  %v1597_v32 = vpop.eup %1596  ;;  %1561 = vset.pattern.permute.xlu0 %v1681_v29  ;;  %v655_v30 = vpop.permute.xlu1 %654 }
 0x2e1   :  { %774 = vperm.xlu1 %1560, %v1746_v8   ;;  %778 = vperm.xlu0 %1561, %v1760_v11  }
 0x2e3   :  { %1347 = vmatpush1.msk.msra.mxu1 %vm193_vm4, %v1597_v32 }
 0x2e4   :  { %1348 = vmatmul.mubr.msk.f32.vlgmr.msra.gmra.mrb[6].mxu1 %vm183_vm5, %v1343_v31  ;;  %v663_v8 = vpop.permute.xlu1 %662 }
 0x2e5   :  { %510 = vmatprep.mubr.f32.mxu1 %v1673_v0  ;;  %782 = vperm.xlu1 %1560, %v1752_v9  }
 0x2e8   :  { %1349 = vmatmul.mubr.msk.f32.gmra.mrb[8].mxu1 %vm183_vm5, %v1344_v33 }
 0x2e9   :  { %516 = vmatprep.mubr.f32.mxu1 %v1673_v0 }
 0x2ec   :  { %1350 = vmatmul.mubr.msk.f32.gmra.mrb[10].mxu1 %vm183_vm5, %v1345_v34 }
 0x2ed   :  { %744 = vmatprep.mubr.f32.mxu1 %v1673_v0 }
 0x3b7   :  { %v506_v37 = vpop.f32.mrb[6].mxu1 }
 0x3b8   :  { %v507_v38 = vadd.f32 %v506_v37, %v415_v36  ;;  %v508_v39 = vpop.f32.mrb[7].mxu1 }
 0x3b9   :  { %v509_v40 = vadd.f32 %v508_v39, %v415_v36 }
 0x3ba   :  { %1598 = vtanh.f32 %v507_v38 }
 0x3bb   :  { %v512_v42 = vpop.f32.mrb[8].mxu1  ;;  %1600 = vtanh.f32 %v509_v40 }
 0x3bc   :  { %v513_v43 = vadd.f32 %v512_v42, %v419_v41  ;;  %v514_v44 = vpop.f32.mrb[9].mxu1 }
 0x3bd   :  { %v515_v45 = vadd.f32 %v514_v44, %v419_v41 }
 0x3be   :  { %1602 = vtanh.f32 %v513_v43 }
 0x3bf   :  { %1604 = vtanh.f32 %v515_v45  ;;  %v518_v46 = vpop.f32.mrb[10].mxu1 }
 0x3c0   :  { %v520_v48 = vpop.f32.mrb[11].mxu1  ;;  %v519_v50 = vadd.f32 %v518_v46, %v423_v47 }
 0x3c1   :  { %v521_v49 = vadd.f32 %v520_v48, %v423_v47 }
 0x3c3   :  { %1606 = vtanh.f32 %v521_v49  ;;  %v1367_v49 = vld [vmem:[%s2094_s2 + $0x78] sm:$0xff] }
 0x3c4   :  { %v1599_v51 = vpop.eup %1598  ;;  %1608 = vtanh.f32 %v519_v50 }
 0x3c5   :  { %v1601_v52 = vpop.eup %1600 }
 0x3c8   :  { %v1603_v53 = vpop.eup %1602 }
 0x3c9   :  { %v1605_v54 = vpop.eup %1604  ;;  %v1518_v55 = vpack.c.bf16 %v1603_v53, %v1599_v51  ;;  %v1368_v51 = vld [vmem:[%s2094_s2 + $0x80] sm:$0xff]  ;;  %v775_v53 = vpop.permute.xlu1 %774 }
 0x3ca   :  { %v1516_v56 = vpack.c.bf16 %v1605_v54, %v1601_v52  ;;  %v1369_v52 = vld [vmem:[%s2094_s2 + $0x88] sm:$0xf] }
 0x3cc   :  { %1517 = vmatprep.subr.bf16.mxu0 %v1516_v56 }
 0x3cd   :  { %v1607_v57 = vpop.eup %1606  ;;  %1519 = vmatpush1.bf16.msra.mxu0 %v1518_v55 }
 0x3ce   :  { %1354 = vmatprep.subr.msk.mxu0 %vm193_vm4, %v1607_v57  ;;  %v1609_v59 = vpop.eup %1608 }
 0x3d1   :  { %1355 = vmatpush1.msk.msra.mxu0 %vm193_vm4, %v1609_v59 }
 0x3d2   :  { %1356 = vmatmul.mubr.msk.f32.vlgmr.msra.gmra.mrb[12].mxu0 %vm183_vm5, %v1351_v58  ;;  %v779_v58 = vpop.permute.xlu0 %778 }
 0x3d3   :  { %630 = vmatprep.mubr.f32.mxu0 %v1673_v0 }
 0x3d6   :  { %1357 = vmatmul.mubr.msk.f32.gmra.mrb[14].mxu0 %vm183_vm5, %v1352_v60 }
 0x3d7   :  { %636 = vmatprep.mubr.f32.mxu0 %v1673_v0 }
 0x3da   :  { %1358 = vmatmul.mubr.msk.f32.gmra.mrb[16].mxu0 %vm183_vm5, %v1353_v61 }
 0x3db   :  { %864 = vmatprep.mubr.f32.mxu0 %v1673_v0 }
 0x4a5   :  { %v626_v1 = vpop.f32.mrb[12].mxu0 }
 0x4a6   :  { %v627_v2 = vadd.f32 %v626_v1, %v535_v63  ;;  %v628_v3 = vpop.f32.mrb[13].mxu0 }
 0x4a7   :  { %v629_v4 = vadd.f32 %v628_v3, %v535_v63 }
 0x4a8   :  { %1610 = vtanh.f32 %v627_v2 }
 0x4a9   :  { %v632_v6 = vpop.f32.mrb[14].mxu0  ;;  %1612 = vtanh.f32 %v629_v4  ;;  %v953_v4 = vld [vmem:[#allocation2] sm:$0xff] }
 0x4aa   :  { %v633_v7 = vadd.f32 %v632_v6, %v539_v5  ;;  %v634_v10 = vpop.f32.mrb[15].mxu0 }
 0x4ab   :  { %v635_v12 = vadd.f32 %v634_v10, %v539_v5  ;;  %v954_v5 = vld [vmem:[#allocation2 + $0x8] sm:$0xff] }
 0x4ac   :  { %1614 = vtanh.f32 %v633_v7  ;;  %v1528_v6 = vpack.c.bf16 %v954_v5, %v953_v4 }
 0x4ad   :  { %1616 = vtanh.f32 %v635_v12  ;;  %v638_v13 = vpop.f32.mrb[16].mxu0  ;;  %v955_v12 = vld [vmem:[#allocation2 + $0x10] sm:$0xf] }
 0x4ae   :  { %v640_v15 = vpop.f32.mrb[17].mxu0  ;;  %v639_v17 = vadd.f32 %v638_v13, %v543_v14 }
 0x4af   :  { %v641_v16 = vadd.f32 %v640_v15, %v543_v14 }
 0x4b1   :  { %1618 = vtanh.f32 %v641_v16 }
 0x4b2   :  { %v1611_v18 = vpop.eup %1610  ;;  %1620 = vtanh.f32 %v639_v17 }
 0x4b3   :  { %v1613_v19 = vpop.eup %1612 }
 0x4b6   :  { %v1615_v20 = vpop.eup %1614 }
 0x4b7   :  { %v1617_v21 = vpop.eup %1616  ;;  %v1522_v22 = vpack.c.bf16 %v1615_v20, %v1611_v18 }
 0x4b8   :  { %v1520_v23 = vpack.c.bf16 %v1617_v21, %v1613_v19 }
 0x4ba   :  { %1521 = vmatprep.subr.bf16.mxu1 %v1520_v23 }
 0x4bb   :  { %v1619_v24 = vpop.eup %1618  ;;  %1523 = vmatpush1.bf16.msra.mxu1 %v1522_v22 }
 0x4bc   :  { %1362 = vmatprep.subr.msk.mxu1 %vm193_vm4, %v1619_v24  ;;  %v1621_v26 = vpop.eup %1620 }
 0x4bf   :  { %1363 = vmatpush1.msk.msra.mxu1 %vm193_vm4, %v1621_v26 }
 0x4c0   :  { %1364 = vmatmul.mubr.msk.f32.vlgmr.msra.gmra.mrb[12].mxu1 %vm183_vm5, %v1359_v25  ;;  %1532 = vmatprep.subr.bf16.mxu1 %v1528_v6 }
 0x4c1   :  { %750 = vmatprep.mubr.f32.mxu1 %v1673_v0  ;;  %1534 = vmatpush3.bf16.msra.mxu1 %v1528_v6 }
 0x4c2   :  { %1533 = vmatprep.subr.msk.mxu1 %vm193_vm4, %v955_v12 }
 0x4c4   :  { %1365 = vmatmul.mubr.msk.f32.gmra.mrb[14].mxu1 %vm183_vm5, %v1360_v27 }
 0x4c5   :  { %756 = vmatprep.mubr.f32.mxu1 %v1673_v0  ;;  %1535 = vmatpush3.msk.msra.mxu1 %vm193_vm4, %v955_v12 }
 0x4c8   :  { %1366 = vmatmul.mubr.msk.f32.gmra.mrb[16].mxu1 %vm183_vm5, %v1361_v28 }
 0x593   :  { %v746_v31 = vpop.f32.mrb[12].mxu1 }
 0x594   :  { %v747_v32 = vadd.f32 %v746_v31, %v655_v30  ;;  %v748_v33 = vpop.f32.mrb[13].mxu1 }
 0x595   :  { %v749_v34 = vadd.f32 %v748_v33, %v655_v30 }
 0x596   :  { %1622 = vtanh.f32 %v747_v32 }
 0x597   :  { %v752_v36 = vpop.f32.mrb[14].mxu1  ;;  %1624 = vtanh.f32 %v749_v34 }
 0x598   :  { %v753_v37 = vadd.f32 %v752_v36, %v659_v35  ;;  %v754_v38 = vpop.f32.mrb[15].mxu1 }
 0x599   :  { %v755_v39 = vadd.f32 %v754_v38, %v659_v35 }
 0x59a   :  { %1626 = vtanh.f32 %v753_v37 }
 0x59b   :  { %1628 = vtanh.f32 %v755_v39  ;;  %v758_v40 = vpop.f32.mrb[16].mxu1 }
 0x59c   :  { %v760_v41 = vpop.f32.mrb[17].mxu1  ;;  %v759_v42 = vadd.f32 %v758_v40, %v663_v8 }
 0x59d   :  { %v761_v11 = vadd.f32 %v760_v41, %v663_v8 }
 0x59f   :  { %1630 = vtanh.f32 %v761_v11 }
 0x5a0   :  { %v1623_v9 = vpop.eup %1622  ;;  %1632 = vtanh.f32 %v759_v42 }
 0x5a1   :  { %v1625_v43 = vpop.eup %1624 }
 0x5a4   :  { %v1627_v44 = vpop.eup %1626 }
 0x5a5   :  { %v1629_v45 = vpop.eup %1628  ;;  %v1526_v46 = vpack.c.bf16 %v1627_v44, %v1623_v9 }
 0x5a6   :  { %v1524_v47 = vpack.c.bf16 %v1629_v45, %v1625_v43 }
 0x5a8   :  { %1525 = vmatprep.subr.bf16.mxu0 %v1524_v47 }
 0x5a9   :  { %v1631_v48 = vpop.eup %1630  ;;  %1527 = vmatpush1.bf16.msra.mxu0 %v1526_v46  ;;  %v1930_v46 = vld [vmem:[%s2097_s5] ss:$0 sm:$0xff] }
 0x5aa   :  { %1370 = vmatprep.subr.msk.mxu0 %vm193_vm4, %v1631_v48  ;;  %v1633_v50 = vpop.eup %1632 }
 0x5ad   :  { %1371 = vmatpush1.msk.msra.mxu0 %vm193_vm4, %v1633_v50 }
 0x5ae   :  { %1372 = vmatmul.mubr.msk.f32.vlgmr.msra.gmra.mrb[18].mxu0 %vm183_vm5, %v1367_v49  ;;  %1529 = vmatprep.subr.bf16.mxu0 %v1528_v6 }
 0x5af   :  { %870 = vmatprep.mubr.f32.mxu0 %v1673_v0  ;;  %1531 = vmatpush3.bf16.msra.mxu0 %v1528_v6 }
 0x5b0   :  { %1448 = vmatprep.subr.msk.mxu0 %vm193_vm4, %v955_v12 }
 0x5b2   :  { %1373 = vmatmul.mubr.msk.f32.gmra.mrb[20].mxu0 %vm183_vm5, %v1368_v51 }
 0x5b3   :  { %876 = vmatprep.mubr.f32.mxu0 %v1673_v0  ;;  %v783_v0 = vpop.permute.xlu1 %782  ;;  %1449 = vmatpush3.msk.msra.mxu0 %vm193_vm4, %v955_v12 }
 0x5b6   :  { %1374 = vmatmul.mubr.msk.f32.gmra.mrb[22].mxu0 %vm183_vm5, %v1369_v52 }
 0x681   :  { %v866_v54 = vpop.f32.mrb[18].mxu0 }
 0x682   :  { %v867_v55 = vadd.f32 %v866_v54, %v775_v53  ;;  %v868_v56 = vpop.f32.mrb[19].mxu0 }
 0x683   :  { %v869_v57 = vadd.f32 %v868_v56, %v775_v53 }
 0x684   :  { %1634 = vtanh.f32 %v867_v55 }
 0x685   :  { %1636 = vtanh.f32 %v869_v57  ;;  %v872_v59 = vpop.f32.mrb[20].mxu0 }
 0x686   :  { %v873_v60 = vadd.f32 %v872_v59, %v779_v58  ;;  %v874_v61 = vpop.f32.mrb[21].mxu0 }
 0x687   :  { %v875_v62 = vadd.f32 %v874_v61, %v779_v58 }
 0x688   :  { %1638 = vtanh.f32 %v873_v60 }
 0x689   :  { %1640 = vtanh.f32 %v875_v62  ;;  %v878_v63 = vpop.f32.mrb[22].mxu0 }
 0x68a   :  { %v879_v1 = vadd.f32 %v878_v63, %v783_v0  ;;  %v880_v2 = vpop.f32.mrb[23].mxu0 }
 0x68b   :  { %v881_v3 = vadd.f32 %v880_v2, %v783_v0 }
 0x68c   :  { %1642 = vtanh.f32 %v879_v1 }
 0x68d   :  { %1644 = vtanh.f32 %v881_v3 }
 0x68e   :  { %v1635_v7 = vpop.eup %1634 }
 0x68f   :  { %v1637_v10 = vpop.eup %1636  ;;  %889 = vxpose.xlu1.b32.start [1/3] (short) %v1635_v7, 128 }
 0x690   :  { %921 = vxpose.xlu0.b32.start [1/3] (short) %v1637_v10, 128 }
 0x692   :  { %v1639_v13 = vpop.eup %1638 }
 0x693   :  { %v1641_v14 = vpop.eup %1640  ;;  %890 = vxpose.xlu1.b32.cont [2/3] (short) %v1639_v13, 128 }
 0x694   :  { %922 = vxpose.xlu0.b32.cont [2/3] (short) %v1641_v14, 128 }
 0x696   :  { %v1643_v15 = vpop.eup %1642 }
 0x697   :  { %v1645_v16 = vpop.eup %1644  ;;  %891 = vxpose.xlu1.b32.end [3/3] (short) %v1643_v15, 128 }
 0x698   :  { %923 = vxpose.xlu0.b32.end [3/3] (short) %v1645_v16, 128 }
 0x70f   :  { %v905_v17 = vpop.trf.xlu1 }
 0x710   :  { %1450 = vmatprep.mubr.msk.f32.mxu0 %vm183_vm5, %v905_v17  ;;  %v937_v18 = vpop.trf.xlu0 }
 0x713   :  { %v906_v19 = vpop.trf.xlu1 }
 0x714   :  { %1451 = vmatmul.mubr.msk.f32.vlgmr.msra.gmra.mrb[24].mxu0 %vm183_vm5, %v906_v19  ;;  %v938_v20 = vpop.trf.xlu0 }
 0x717   :  { %v907_v21 = vpop.trf.xlu1 }
 0x718   :  { %1453 = vmatprep.mubr.msk.f32.mxu0 %vm183_vm5, %v907_v21  ;;  %v939_v23 = vpop.trf.xlu0 }
 0x71b   :  { %v908_v22 = vpop.trf.xlu1 }
 0x71c   :  { %1454 = vmatmul.mubr.msk.f32.gmra.mrb[26].mxu0 %vm183_vm5, %v908_v22  ;;  %v940_v25 = vpop.trf.xlu0 }
 0x71f   :  { %v909_v24 = vpop.trf.xlu1 }
 0x720   :  { %1456 = vmatprep.mubr.msk.f32.mxu0 %vm183_vm5, %v909_v24  ;;  %v941_v28 = vpop.trf.xlu0 }
 0x723   :  { %v910_v26 = vpop.trf.xlu1 }
 0x724   :  { %1457 = vmatmul.mubr.msk.f32.gmra.mrb[28].mxu0 %vm183_vm5, %v910_v26  ;;  %v942_v30 = vpop.trf.xlu0 }
 0x727   :  { %v911_v27 = vpop.trf.xlu1 }
 0x728   :  { %1459 = vmatprep.mubr.msk.f32.mxu0 %vm183_vm5, %v911_v27  ;;  %v943_v33 = vpop.trf.xlu0 }
 0x72b   :  { %v912_v29 = vpop.trf.xlu1 }
 0x72c   :  { %1460 = vmatmul.mubr.msk.f32.gmra.mrb[30].mxu0 %vm183_vm5, %v912_v29  ;;  %v944_v35 = vpop.trf.xlu0 }
 0x72f   :  { %v913_v31 = vpop.trf.xlu1 }
 0x730   :  { %1462 = vmatprep.mubr.msk.f32.mxu0 %vm183_vm5, %v913_v31  ;;  %v945_v38 = vpop.trf.xlu0 }
 0x733   :  { %v914_v32 = vpop.trf.xlu1 }
 0x734   :  { %1463 = vmatmul.mubr.msk.f32.gmra.mrb[32].mxu0 %vm183_vm5, %v914_v32  ;;  %v946_v40 = vpop.trf.xlu0 }
 0x737   :  { %v915_v34 = vpop.trf.xlu1 }
 0x738   :  { %1465 = vmatprep.mubr.msk.f32.mxu0 %vm183_vm5, %v915_v34  ;;  %v947_v11 = vpop.trf.xlu0 }
 0x73b   :  { %v916_v36 = vpop.trf.xlu1 }
 0x73c   :  { %1466 = vmatmul.mubr.msk.f32.gmra.mrb[34].mxu0 %vm183_vm5, %v916_v36  ;;  %v948_v42 = vpop.trf.xlu0 }
 0x73f   :  { %v917_v37 = vpop.trf.xlu1 }
 0x740   :  { %1468 = vmatprep.mubr.msk.f32.mxu1 %vm183_vm5, %v917_v37  ;;  %v949_v9 = vpop.trf.xlu0 }
 0x743   :  { %v918_v39 = vpop.trf.xlu1 }
 0x744   :  { %1469 = vmatmul.mubr.msk.f32.vlgmr.msra.gmra.mrb[18].mxu1 %vm183_vm5, %v918_v39  ;;  %v950_v43 = vpop.trf.xlu0 }
 0x747   :  { %v919_v8 = vpop.trf.xlu1 }
 0x748   :  { %1471 = vmatprep.mubr.msk.f32.mxu1 %vm183_vm5, %v919_v8  ;;  %v951_v44 = vpop.trf.xlu0 }
 0x74b   :  { %v920_v41 = vpop.trf.xlu1 }
 0x74c   :  { %1472 = vmatmul.mubr.msk.f32.gmra.mrb[20].mxu1 %vm183_vm5, %v920_v41  ;;  %v952_v45 = vpop.trf.xlu0 }
 0x74d   :  { %1474 = vmatprep.mubr.msk.f32.mxu1 %vm183_vm5, %v937_v18 }
 0x750   :  { %1475 = vmatmul.mubr.msk.f32.gmra.mrb[22].mxu1 %vm183_vm5, %v938_v20 }
 0x751   :  { %1477 = vmatprep.mubr.msk.f32.mxu1 %vm183_vm5, %v939_v23 }
 0x754   :  { %1478 = vmatmul.mubr.msk.f32.gmra.mrb[24].mxu1 %vm183_vm5, %v940_v25 }
 0x755   :  { %1480 = vmatprep.mubr.msk.f32.mxu1 %vm183_vm5, %v941_v28 }
 0x758   :  { %1481 = vmatmul.mubr.msk.f32.gmra.mrb[26].mxu1 %vm183_vm5, %v942_v30 }
 0x759   :  { %1483 = vmatprep.mubr.msk.f32.mxu1 %vm183_vm5, %v943_v33 }
 0x75c   :  { %1484 = vmatmul.mubr.msk.f32.gmra.mrb[28].mxu1 %vm183_vm5, %v944_v35 }
 0x75d   :  { %1486 = vmatprep.mubr.msk.f32.mxu1 %vm183_vm5, %v945_v38 }
 0x760   :  { %1487 = vmatmul.mubr.msk.f32.gmra.mrb[30].mxu1 %vm183_vm5, %v946_v40 }
 0x761   :  { %1489 = vmatprep.mubr.msk.f32.mxu1 %vm183_vm5, %v947_v11 }
 0x764   :  { %1490 = vmatmul.mubr.msk.f32.gmra.mrb[32].mxu1 %vm183_vm5, %v948_v42 }
 0x765   :  { %1492 = vmatprep.mubr.msk.f32.mxu1 %vm183_vm5, %v949_v9 }
 0x768   :  { %1493 = vmatmul.mubr.msk.f32.gmra.mrb[34].mxu1 %vm183_vm5, %v950_v43 }
 0x769   :  { %1495 = vmatprep.mubr.msk.f32.mxu1 %vm183_vm5, %v951_v44 }
 0x76c   :  { %1496 = vmatmul.mubr.msk.f32.gmra.mrb[36].mxu1 %vm183_vm5, %v952_v45 }
 0x7e7   :  { %v1452_v47 = vpop.f32.mrb[24].mxu0 }
 0x7e8   :  { %v1134_v48 = vadd.f32 %v1452_v47, %v1930_v46  ;;  %v1128_v49 = vpop.f32.mrb[25].mxu0 }
 0x7e9   :  { %v1129_v50 = vadd.f32 %v1930_v46, %v1128_v49 }
 0x7ea   :  { %1289 = vst.msk [vmem:[%s2098_s6 + $0x8] sm:$0xff] %vm1287_vm6, %v1134_v48 }
 0x7eb   :  { %1288 = vst.msk [vmem:[%s2098_s6] sm:$0xff] %vm1287_vm6, %v1129_v50 }
 0x7ef   :  { %v1455_v51 = vpop.f32.mrb[26].mxu0 }
 0x7f0   :  { %v1144_v52 = vadd.f32 %v1455_v51, %v1930_v46  ;;  %v1138_v53 = vpop.f32.mrb[27].mxu0 }
 0x7f1   :  { %v1139_v54 = vadd.f32 %v1930_v46, %v1138_v53 }
 0x7f2   :  { %1291 = vst.msk [vmem:[%s2098_s6 + $0x18] sm:$0xff] %vm1287_vm6, %v1144_v52 }
 0x7f3   :  { %1290 = vst.msk [vmem:[%s2098_s6 + $0x10] sm:$0xff] %vm1287_vm6, %v1139_v54 }
 0x7f7   :  { %v1458_v55 = vpop.f32.mrb[28].mxu0 }
 0x7f8   :  { %v1154_v56 = vadd.f32 %v1458_v55, %v1930_v46  ;;  %v1148_v57 = vpop.f32.mrb[29].mxu0 }
 0x7f9   :  { %v1149_v58 = vadd.f32 %v1930_v46, %v1148_v57 }
 0x7fa   :  { %1293 = vst.msk [vmem:[%s2098_s6 + $0x28] sm:$0xff] %vm1287_vm6, %v1154_v56 }
 0x7fb   :  { %1292 = vst.msk [vmem:[%s2098_s6 + $0x20] sm:$0xff] %vm1287_vm6, %v1149_v58 }
 0x7ff   :  { %v1461_v59 = vpop.f32.mrb[30].mxu0 }
 0x800   :  { %v1164_v60 = vadd.f32 %v1461_v59, %v1930_v46  ;;  %v1158_v61 = vpop.f32.mrb[31].mxu0 }
 0x801   :  { %v1159_v62 = vadd.f32 %v1930_v46, %v1158_v61 }
 0x802   :  { %1295 = vst.msk [vmem:[%s2098_s6 + $0x38] sm:$0xff] %vm1287_vm6, %v1164_v60 }
 0x803   :  { %1294 = vst.msk [vmem:[%s2098_s6 + $0x30] sm:$0xff] %vm1287_vm6, %v1159_v62 }
 0x807   :  { %v1464_v0 = vpop.f32.mrb[32].mxu0 }
 0x808   :  { %v1174_v63 = vadd.f32 %v1464_v0, %v1930_v46  ;;  %v1168_v1 = vpop.f32.mrb[33].mxu0 }
 0x809   :  { %v1169_v2 = vadd.f32 %v1930_v46, %v1168_v1 }
 0x80a   :  { %1297 = vst.msk [vmem:[%s2098_s6 + $0x48] sm:$0xff] %vm1287_vm6, %v1174_v63 }
 0x80b   :  { %1296 = vst.msk [vmem:[%s2098_s6 + $0x40] sm:$0xff] %vm1287_vm6, %v1169_v2 }
 0x80f   :  { %v1467_v3 = vpop.f32.mrb[34].mxu0 }
 0x810   :  { %v1184_v4 = vadd.f32 %v1467_v3, %v1930_v46  ;;  %v1178_v5 = vpop.f32.mrb[35].mxu0 }
 0x811   :  { %v1179_v6 = vadd.f32 %v1930_v46, %v1178_v5 }
 0x812   :  { %1299 = vst.msk [vmem:[%s2098_s6 + $0x58] sm:$0xff] %vm1287_vm6, %v1184_v4 }
 0x813   :  { %1298 = vst.msk [vmem:[%s2098_s6 + $0x50] sm:$0xff] %vm1287_vm6, %v1179_v6 }
 0x817   :  { %v1470_v7 = vpop.f32.mrb[18].mxu1 }
 0x818   :  { %v1194_v10 = vadd.f32 %v1470_v7, %v1930_v46  ;;  %v1188_v12 = vpop.f32.mrb[19].mxu1 }
 0x819   :  { %v1189_v13 = vadd.f32 %v1930_v46, %v1188_v12 }
 0x81a   :  { %1301 = vst.msk [vmem:[%s2098_s6 + $0x68] sm:$0xff] %vm1287_vm6, %v1194_v10 }
 0x81b   :  { %1300 = vst.msk [vmem:[%s2098_s6 + $0x60] sm:$0xff] %vm1287_vm6, %v1189_v13 }
 0x81f   :  { %v1473_v14 = vpop.f32.mrb[20].mxu1 }
 0x820   :  { %v1204_v15 = vadd.f32 %v1473_v14, %v1930_v46  ;;  %v1198_v16 = vpop.f32.mrb[21].mxu1 }
 0x821   :  { %v1199_v17 = vadd.f32 %v1930_v46, %v1198_v16 }
 0x822   :  { %1303 = vst.msk [vmem:[%s2098_s6 + $0x78] sm:$0xff] %vm1287_vm6, %v1204_v15 }
 0x823   :  { %1302 = vst.msk [vmem:[%s2098_s6 + $0x70] sm:$0xff] %vm1287_vm6, %v1199_v17  ;;  %v1476_v18 = vpop.f32.mrb[22].mxu1 }
 0x824   :  { %v1214_v19 = vadd.f32 %v1476_v18, %v1930_v46  ;;  %v1208_v20 = vpop.f32.mrb[23].mxu1 }
 0x825   :  { %v1209_v21 = vadd.f32 %v1930_v46, %v1208_v20 }
 0x826   :  { %1305 = vst.msk [vmem:[%s2098_s6 + $0x88] sm:$0xff] %vm1287_vm6, %v1214_v19 }
 0x827   :  { %1304 = vst.msk [vmem:[%s2098_s6 + $0x80] sm:$0xff] %vm1287_vm6, %v1209_v21  ;;  %v1479_v22 = vpop.f32.mrb[24].mxu1 }
 0x828   :  { %v1224_v23 = vadd.f32 %v1479_v22, %v1930_v46  ;;  %v1218_v24 = vpop.f32.mrb[25].mxu1 }
 0x829   :  { %v1219_v25 = vadd.f32 %v1930_v46, %v1218_v24 }
 0x82a   :  { %1307 = vst.msk [vmem:[%s2098_s6 + $0x98] sm:$0xff] %vm1287_vm6, %v1224_v23 }
 0x82b   :  { %1306 = vst.msk [vmem:[%s2098_s6 + $0x90] sm:$0xff] %vm1287_vm6, %v1219_v25  ;;  %v1482_v26 = vpop.f32.mrb[26].mxu1 }
 0x82c   :  { %v1234_v27 = vadd.f32 %v1482_v26, %v1930_v46  ;;  %v1228_v28 = vpop.f32.mrb[27].mxu1 }
 0x82d   :  { %v1229_v29 = vadd.f32 %v1930_v46, %v1228_v28 }
 0x82e   :  { %1309 = vst.msk [vmem:[%s2098_s6 + $0xa8] sm:$0xff] %vm1287_vm6, %v1234_v27 }
 0x82f   :  { %1308 = vst.msk [vmem:[%s2098_s6 + $0xa0] sm:$0xff] %vm1287_vm6, %v1229_v29  ;;  %v1485_v30 = vpop.f32.mrb[28].mxu1 }
 0x830   :  { %v1244_v31 = vadd.f32 %v1485_v30, %v1930_v46  ;;  %v1238_v32 = vpop.f32.mrb[29].mxu1 }
 0x831   :  { %v1239_v33 = vadd.f32 %v1930_v46, %v1238_v32 }
 0x832   :  { %1311 = vst.msk [vmem:[%s2098_s6 + $0xb8] sm:$0xff] %vm1287_vm6, %v1244_v31 }
 0x833   :  { %1310 = vst.msk [vmem:[%s2098_s6 + $0xb0] sm:$0xff] %vm1287_vm6, %v1239_v33  ;;  %v1488_v34 = vpop.f32.mrb[30].mxu1 }
 0x834   :  { %v1254_v35 = vadd.f32 %v1488_v34, %v1930_v46  ;;  %v1248_v36 = vpop.f32.mrb[31].mxu1 }
 0x835   :  { %v1249_v37 = vadd.f32 %v1930_v46, %v1248_v36 }
 0x836   :  { %1313 = vst.msk [vmem:[%s2098_s6 + $0xc8] sm:$0xff] %vm1287_vm6, %v1254_v35 }
 0x837   :  { %1312 = vst.msk [vmem:[%s2098_s6 + $0xc0] sm:$0xff] %vm1287_vm6, %v1249_v37  ;;  %v1491_v38 = vpop.f32.mrb[32].mxu1 }
 0x838   :  { %v1264_v39 = vadd.f32 %v1491_v38, %v1930_v46  ;;  %v1258_v40 = vpop.f32.mrb[33].mxu1 }
 0x839   :  { %v1259_v8 = vadd.f32 %v1930_v46, %v1258_v40 }
 0x83a   :  { %1315 = vst.msk [vmem:[%s2098_s6 + $0xd8] sm:$0xff] %vm1287_vm6, %v1264_v39 }
 0x83b   :  { %1314 = vst.msk [vmem:[%s2098_s6 + $0xd0] sm:$0xff] %vm1287_vm6, %v1259_v8  ;;  %v1494_v41 = vpop.f32.mrb[34].mxu1 }
 0x83c   :  { %v1274_v11 = vadd.f32 %v1494_v41, %v1930_v46  ;;  %v1268_v42 = vpop.f32.mrb[35].mxu1 }
 0x83d   :  { %v1269_v9 = vadd.f32 %v1930_v46, %v1268_v42 }
 0x83e   :  { %1317 = vst.msk [vmem:[%s2098_s6 + $0xe8] sm:$0xff] %vm1287_vm6, %v1274_v11 }
 0x83f   :  { %1316 = vst.msk [vmem:[%s2098_s6 + $0xe0] sm:$0xff] %vm1287_vm6, %v1269_v9  ;;  %v1497_v43 = vpop.f32.mrb[36].mxu1 }
 0x840   :  { %v1284_v44 = vadd.f32 %v1497_v43, %v1930_v46  ;;  %v1278_v45 = vpop.f32.mrb[37].mxu1 }
 0x841   :  { %v1279_v47 = vadd.f32 %v1930_v46, %v1278_v45 }
 0x842   :  { %1319 = vst.msk [vmem:[%s2098_s6 + $0xf8] sm:$0xff] %vm1287_vm6, %v1284_v44 }
 0x843   :  { %1318 = vst.msk [vmem:[%s2098_s6 + $0xf0] sm:$0xff] %vm1287_vm6, %v1279_v47 }
 0x844   :  { %1324 = vsyncpa [#allocation3], 1 }

</bundles_post_ra>
